<compile_context>
chip_gen: v5e
topology: v5e:2x2
jax: 0.10.0
libtpu: 0.0.40
codegen_flags: <defaults>
</compile_context>

<pallas_src>
import functools

import jax
import jax.numpy as jnp
from jax.experimental import pallas as pl
from jax.experimental.pallas import tpu as pltpu


# ----------------------------------------------------------------------------
# Fused kernel: sky / effective masks + 'conv' encoder (3x3 conv + ReLU)
# ----------------------------------------------------------------------------
def _fused_encoder_kernel(patch_ref, mask_ref, w_ref, b_ref,
                          feat_ref, sky_ref, eff_ref, *, tb):
    """Blocks per grid step (TB images batched):
         patch_ref: (TB, KKCp, HW)  bf16   im2col patches, lane axis = H*W
         mask_ref : (TB, 3,    HW)  f32
         w_ref    : (Cout, KKCp)    bf16   (shared across grid steps)
         b_ref    : (Cout, 1)       f32
         feat_ref : (TB, Cout, HW)  f32    lane-dense output
         sky_ref  : (TB, 1,    HW)  f32
         eff_ref  : (TB, 1,    HW)  f32
    """
    w = w_ref[...]
    b = b_ref[...]
    # One clean MXU matmul per image: (Cout, KKCp) @ (KKCp, HW), bf16 operands,
    # f32 accumulation, lane-dense unmasked store of the (Cout, HW) result.
    for t in range(tb):  # tb is small & static -> unrolled
        acc = jnp.dot(w, patch_ref[t], preferred_element_type=jnp.float32)
        feat_ref[t] = jnp.maximum(acc + b, 0.0).astype(feat_ref.dtype)

    # Mask math: a few VPU ops, completely hidden under the conv DMA/MXU time.
    m = mask_ref[...]                                            # (TB, 3, HW)
    sky_ref[...] = (m[:, 0:1, :] == 0.0).astype(jnp.float32)
    eff_ref[...] = (m[:, 1:2, :] * m[:, 2:3, :] > 0.0).astype(jnp.float32)


def _pick_tb(bn, bytes_per_image, budget_bytes=4 << 20):
    """Largest images-per-block that divides BN, keeps the grid >= 2 (so v7x's
    two TensorCores still get work) and keeps the block well inside the scoped
    VMEM default (double-buffering included via a conservative budget)."""
    tb = 1
    for cand in (2, 4, 8, 16):
        if bn % cand != 0:
            continue
        if bn // cand < 2:
            break
        if cand * bytes_per_image > budget_bytes:
            break
        tb = cand
    return tb


@jax.jit
def fused_encoder_pallas(image_chw, mask_chw, conv_w, conv_b):
    """image_chw, mask_chw: (BN, 3, H, W) f32.
    Returns feat (BN, Cout, H, W) f32, sky (BN, 1, H, W), eff (BN, 1, H, W)."""
    BN, Cin, H, W = image_chw.shape
    Cm = mask_chw.shape[1]
    Cout, _, K, _ = conv_w.shape
    HW = H * W
    pad = K // 2

    # ---- wrapper glue (fused by XLA): im2col, lane-dense flatten, KKC pad ----
    x_pad = jnp.pad(image_chw, ((0, 0), (0, 0), (pad, pad), (pad, pad)))
    cols = []
    for dy in range(K):
        for dx in range(K):
            # row order = (dy, dx, ci); matches the weight reorder below.
            cols.append(x_pad[:, :, dy:dy + H, dx:dx + W].reshape(BN, Cin, HW))
    patches = jnp.concatenate(cols, axis=1)                  # (BN, K*K*Cin, HW)
    KKC = K * K * Cin
    KKCp = -(-KKC // 32) * 32                                # 27 -> 32
    patches = jnp.pad(patches, ((0, 0), (0, KKCp - KKC), (0, 0)))
    patches = patches.astype(jnp.bfloat16)

    w2 = jnp.transpose(conv_w, (0, 2, 3, 1)).reshape(Cout, KKC)   # (Cout, dy,dx,ci)
    w2 = jnp.pad(w2, ((0, 0), (0, KKCp - KKC))).astype(jnp.bfloat16)
    b2 = conv_b.reshape(Cout, 1).astype(jnp.float32)

    mask_flat = mask_chw.reshape(BN, Cm, HW)                 # lane-dense masks

    bytes_per_image = HW * (KKCp * 2 + Cm * 4 + Cout * 4 + 2 * 4)
    tb = _pick_tb(BN, bytes_per_image)
    grid = (BN // tb,)

    kern = functools.partial(_fused_encoder_kernel, tb=tb)
    feat, sky, eff = pl.pallas_call(
        kern,
        out_shape=(
            jax.ShapeDtypeStruct((BN, Cout, HW), jnp.float32),
            jax.ShapeDtypeStruct((BN, 1, HW), jnp.float32),
            jax.ShapeDtypeStruct((BN, 1, HW), jnp.float32),
        ),
        grid=grid,
        in_specs=[
            pl.BlockSpec((tb, KKCp, HW), lambda i: (i, 0, 0)),
            pl.BlockSpec((tb, Cm, HW), lambda i: (i, 0, 0)),
            pl.BlockSpec((Cout, KKCp), lambda i: (0, 0)),
            pl.BlockSpec((Cout, 1), lambda i: (0, 0)),
        ],
        out_specs=(
            pl.BlockSpec((tb, Cout, HW), lambda i: (i, 0, 0)),
            pl.BlockSpec((tb, 1, HW), lambda i: (i, 0, 0)),
            pl.BlockSpec((tb, 1, HW), lambda i: (i, 0, 0)),
        ),
        compiler_params=pltpu.CompilerParams(
            dimension_semantics=("parallel",)),
    )(patches, mask_flat, w2, b2)

    # Free row-major reshapes back to NCHW (no lane-collapsing inside kernel).
    return (feat.reshape(BN, Cout, H, W),
            sky.reshape(BN, 1, H, W),
            eff.reshape(BN, 1, H, W))


# ----------------------------------------------------------------------------
# UnifiedEncoder.forward equivalent (resize_projection_input=False branch,
# encoder_modules = ['conv'])
# ----------------------------------------------------------------------------
def unified_encoder_forward(batch, params):
    intrinsics = jnp.stack(batch["images_input_intrinsic"])  # (B, N, 6)
    images = jnp.stack(batch["images_input"])                # (B, N, H, W, 3)
    masks = jnp.stack(batch["images_input_mask"])            # (B, N, H, W, 3)
    poses = jnp.stack(batch["images_input_pose"])            # (B, N, 4, 4)
    B, N, H, W, _ = images.shape

    # Torch asserts int(intr[0,0,5])==h / int(intr[0,0,4])==w.  Only run the
    # host-side check on concrete values so this wrapper stays jit-compatible.
    try:
        assert int(intrinsics[0, 0, 5]) == H and int(intrinsics[0, 0, 4]) == W
    except jax.errors.ConcretizationTypeError:
        pass  # traced: skip host-side validation

    # glue: channel-last -> channel-first, flatten (b n)
    image_chw = jnp.transpose(images, (0, 1, 4, 2, 3))        # (B, N, 3, H, W)
    mask_chw = jnp.transpose(masks, (0, 1, 4, 2, 3))          # (B, N, 3, H, W)

    feat, sky, eff = fused_encoder_pallas(
        image_chw.reshape(B * N, 3, H, W),
        mask_chw.reshape(B * N, 3, H, W),
        params["conv_w"], params["conv_b"])

    # resize_projection_input = False -> intrinsics pass through unchanged
    camera_info = {"intrinsic": intrinsics, "pose": poses}

    out = {
        "conv": feat.reshape(B, N, -1, H, W),
        "original_rgb": image_chw,
        "camera_info": camera_info,
        "input_sky_mask": sky.reshape(B, N, 1, H, W),
        "input_effective_mask": eff.reshape(B, N, 1, H, W),
    }
    return out


# ----------------------------------------------------------------------------
# Reference (plain JAX, f32) for correctness checking
# ----------------------------------------------------------------------------
def _reference(batch, params):
    images = jnp.stack(batch["images_input"])
    masks = jnp.stack(batch["images_input_mask"])
    B, N, H, W, _ = images.shape
    sky = (masks[..., 0:1] == 0.0).astype(jnp.float32)
    eff = (masks[..., 1:2] * masks[..., 2:3] > 0.0).astype(jnp.float32)
    sky = jnp.transpose(sky, (0, 1, 4, 2, 3))
    eff = jnp.transpose(eff, (0, 1, 4, 2, 3))
    img = jnp.transpose(images, (0, 1, 4, 2, 3)).reshape(B * N, 3, H, W)
    conv = jax.lax.conv_general_dilated(
        img, params["conv_w"], window_strides=(1, 1), padding="SAME",
        dimension_numbers=("NCHW", "OIHW", "NCHW"))
    conv = jnp.maximum(conv + params["conv_b"][None, :, None, None], 0.0)
    return sky, eff, conv.reshape(B, N, -1, H, W)


if __name__ == "__main__":
    B, N, H, W = 2, 2, 16, 16
    hidden = 32  # conv_params: out_channels of the synthetic ConvEncoder
    # TODO(synk): ConvEncoder source not in the snippet; Conv2d(3->hidden, k=3,
    #             pad=1) + ReLU with deterministic synthetic weights stands in.

    key = jax.random.PRNGKey(0)
    k_img, k_mask, k_w, k_b = jax.random.split(key, 4)

    images = [
        jax.random.uniform(jax.random.fold_in(k_img, b), (N, H, W, 3),
                           dtype=jnp.float32)
        for b in range(B)
    ]
    masks = [
        jax.random.randint(jax.random.fold_in(k_mask, b), (N, H, W, 3),
                           0, 2).astype(jnp.float32)
        for b in range(B)
    ]
    # intrinsics: [fx, fy, cx, cy, w, h]
    intr = jnp.array([10.0, 10.0, W / 2.0, H / 2.0, float(W), float(H)],
                     dtype=jnp.float32)
    intrinsics = [jnp.tile(intr[None, :], (N, 1)) for _ in range(B)]
    poses = [jnp.tile(jnp.eye(4, dtype=jnp.float32)[None], (N, 1, 1))
             for _ in range(B)]

    batch = {
        "images_input": images,
        "images_input_mask": masks,
        "images_input_intrinsic": intrinsics,
        "images_input_pose": poses,
    }

    params = {
        "conv_w": 0.1 * jax.random.normal(k_w, (hidden, 3, 3, 3),
                                          dtype=jnp.float32),
        "conv_b": 0.01 * jax.random.normal(k_b, (hidden,), dtype=jnp.float32),
    }

    out = unified_encoder_forward(batch, params)
    jax.block_until_ready(out)

    # correctness check against plain-JAX f32 reference
    ref_sky, ref_eff, ref_conv = _reference(batch, params)
    assert jnp.allclose(out["input_sky_mask"], ref_sky)
    assert jnp.allclose(out["input_effective_mask"], ref_eff)
    # bf16 matmul operands (f32 accumulation) vs f32 reference -> loosened tol.
    assert jnp.allclose(out["conv"], ref_conv, atol=2e-2, rtol=2e-2)
    assert out["original_rgb"].shape == (B, N, 3, H, W)
    assert out["camera_info"]["intrinsic"].shape == (B, N, 6)

    print("KERNEL_OK")
</pallas_src>

<mosaic_0001>
module attributes {stable_mosaic.version = 11 : i64} {
  func.func @_fused_encoder_kernel(%arg0: i32, %arg1: memref<2x32x256xbf16, #tpu.memory_space<vmem>>, %arg2: memref<2x3x256xf32, #tpu.memory_space<vmem>>, %arg3: memref<32x32xbf16, #tpu.memory_space<vmem>>, %arg4: memref<32x1xf32, #tpu.memory_space<vmem>>, %arg5: memref<2x32x256xf32, #tpu.memory_space<vmem>>, %arg6: memref<2x1x256xf32, #tpu.memory_space<vmem>>, %arg7: memref<2x1x256xf32, #tpu.memory_space<vmem>>) attributes {dimension_semantics = [#tpu.dimension_semantics<parallel>], iteration_bounds = array<i64: 2>, scalar_prefetch = 0 : i64, scratch_operands = 0 : i64, tpu.core_type = #tpu.core_type<tc>, window_params = [{transform_indices = @transform_0, window_bounds = array<i64: 2, 32, 256>}, {transform_indices = @transform_1, window_bounds = array<i64: 2, 3, 256>}, {pipeline_mode = #tpu.pipeline_mode<synchronous>, transform_indices = @transform_2, window_bounds = array<i64: 32, 32>}, {pipeline_mode = #tpu.pipeline_mode<synchronous>, transform_indices = @transform_3, window_bounds = array<i64: 32, 1>}, {transform_indices = @transform_4, window_bounds = array<i64: 2, 32, 256>}, {transform_indices = @transform_5, window_bounds = array<i64: 2, 1, 256>}, {transform_indices = @transform_6, window_bounds = array<i64: 2, 1, 256>}]} {
    %c0 = arith.constant 0 : index
    %c0_0 = arith.constant 0 : index
    %0 = vector.load %arg3[%c0, %c0_0] : memref<32x32xbf16, #tpu.memory_space<vmem>>, vector<32x32xbf16>
    %c0_1 = arith.constant 0 : index
    %c0_2 = arith.constant 0 : index
    %1 = vector.load %arg4[%c0_1, %c0_2] : memref<32x1xf32, #tpu.memory_space<vmem>>, vector<32x1xf32>
    %c0_3 = arith.constant 0 : index
    %c0_4 = arith.constant 0 : index
    %c0_5 = arith.constant 0 : index
    %2 = vector.load %arg1[%c0_3, %c0_4, %c0_5] : memref<2x32x256xbf16, #tpu.memory_space<vmem>>, vector<1x32x256xbf16>
    %3 = vector.shape_cast %2 : vector<1x32x256xbf16> to vector<32x256xbf16>
    %cst = arith.constant dense<0.000000e+00> : vector<32x256xf32>
    %4 = tpu.matmul %0, %3, %cst {dimension_numbers = #tpu.dot_dimension_numbers<[1], [0], [0], [1], [0, 0, 1, 1], [], []>} : vector<32x32xbf16>, vector<32x256xbf16>, vector<32x256xf32> -> vector<32x256xf32>
    %5 = vector.broadcast %1 : vector<32x1xf32> to vector<32x256xf32>
    %6 = arith.addf %4, %5 : vector<32x256xf32>
    %cst_6 = arith.constant 0.000000e+00 : f32
    %7 = vector.broadcast %cst_6 : f32 to vector<32x256xf32>
    %8 = arith.maximumf %6, %7 : vector<32x256xf32>
    %c0_7 = arith.constant 0 : index
    %c0_8 = arith.constant 0 : index
    %c0_9 = arith.constant 0 : index
    %9 = vector.load %arg5[%c0_7, %c0_8, %c0_9] : memref<2x32x256xf32, #tpu.memory_space<vmem>>, vector<1x32x256xf32>
    %10 = vector.shape_cast %9 : vector<1x32x256xf32> to vector<32x256xf32>
    %11 = vector.shape_cast %8 : vector<32x256xf32> to vector<1x32x256xf32>
    tpu.vector_store %arg5[%c0_7, %c0_8, %c0_9], %11 {strides = array<i32>} : memref<2x32x256xf32, #tpu.memory_space<vmem>>, vector<1x32x256xf32>,
    %c1 = arith.constant 1 : index
    %c0_10 = arith.constant 0 : index
    %c0_11 = arith.constant 0 : index
    %12 = vector.load %arg1[%c1, %c0_10, %c0_11] : memref<2x32x256xbf16, #tpu.memory_space<vmem>>, vector<1x32x256xbf16>
    %13 = vector.shape_cast %12 : vector<1x32x256xbf16> to vector<32x256xbf16>
    %cst_12 = arith.constant dense<0.000000e+00> : vector<32x256xf32>
    %14 = tpu.matmul %0, %13, %cst_12 {dimension_numbers = #tpu.dot_dimension_numbers<[1], [0], [0], [1], [0, 0, 1, 1], [], []>} : vector<32x32xbf16>, vector<32x256xbf16>, vector<32x256xf32> -> vector<32x256xf32>
    %15 = vector.broadcast %1 : vector<32x1xf32> to vector<32x256xf32>
    %16 = arith.addf %14, %15 : vector<32x256xf32>
    %cst_13 = arith.constant 0.000000e+00 : f32
    %17 = vector.broadcast %cst_13 : f32 to vector<32x256xf32>
    %18 = arith.maximumf %16, %17 : vector<32x256xf32>
    %c1_14 = arith.constant 1 : index
    %c0_15 = arith.constant 0 : index
    %c0_16 = arith.constant 0 : index
    %19 = vector.load %arg5[%c1_14, %c0_15, %c0_16] : memref<2x32x256xf32, #tpu.memory_space<vmem>>, vector<1x32x256xf32>
    %20 = vector.shape_cast %19 : vector<1x32x256xf32> to vector<32x256xf32>
    %21 = vector.shape_cast %18 : vector<32x256xf32> to vector<1x32x256xf32>
    tpu.vector_store %arg5[%c1_14, %c0_15, %c0_16], %21 {strides = array<i32>} : memref<2x32x256xf32, #tpu.memory_space<vmem>>, vector<1x32x256xf32>,
    %c0_17 = arith.constant 0 : index
    %c0_18 = arith.constant 0 : index
    %c0_19 = arith.constant 0 : index
    %22 = vector.load %arg2[%c0_17, %c0_18, %c0_19] : memref<2x3x256xf32, #tpu.memory_space<vmem>>, vector<2x3x256xf32>
    %23 = vector.extract_strided_slice %22 {offsets = [0, 0, 0], sizes = [2, 1, 256], strides = [1, 1, 1]} : vector<2x3x256xf32> to vector<2x1x256xf32>
    %cst_20 = arith.constant 0.000000e+00 : f32
    %24 = vector.broadcast %cst_20 : f32 to vector<2x1x256xf32>
    %25 = arith.cmpf oeq, %23, %24 : vector<2x1x256xf32>
    %26 = arith.extui %25 : vector<2x1x256xi1> to vector<2x1x256xi32>
    %27 = arith.sitofp %26 : vector<2x1x256xi32> to vector<2x1x256xf32>
    %c0_21 = arith.constant 0 : index
    %c0_22 = arith.constant 0 : index
    %c0_23 = arith.constant 0 : index
    %28 = vector.load %arg6[%c0_21, %c0_22, %c0_23] : memref<2x1x256xf32, #tpu.memory_space<vmem>>, vector<2x1x256xf32>
    tpu.vector_store %arg6[%c0_21, %c0_22, %c0_23], %27 {strides = array<i32>} : memref<2x1x256xf32, #tpu.memory_space<vmem>>, vector<2x1x256xf32>,
    %29 = vector.extract_strided_slice %22 {offsets = [0, 1, 0], sizes = [2, 1, 256], strides = [1, 1, 1]} : vector<2x3x256xf32> to vector<2x1x256xf32>
    %30 = vector.extract_strided_slice %22 {offsets = [0, 2, 0], sizes = [2, 1, 256], strides = [1, 1, 1]} : vector<2x3x256xf32> to vector<2x1x256xf32>
    %31 = arith.mulf %29, %30 : vector<2x1x256xf32>
    %cst_24 = arith.constant 0.000000e+00 : f32
    %32 = vector.broadcast %cst_24 : f32 to vector<2x1x256xf32>
    %33 = arith.cmpf ogt, %31, %32 : vector<2x1x256xf32>
    %34 = arith.extui %33 : vector<2x1x256xi1> to vector<2x1x256xi32>
    %35 = arith.sitofp %34 : vector<2x1x256xi32> to vector<2x1x256xf32>
    %c0_25 = arith.constant 0 : index
    %c0_26 = arith.constant 0 : index
    %c0_27 = arith.constant 0 : index
    %36 = vector.load %arg7[%c0_25, %c0_26, %c0_27] : memref<2x1x256xf32, #tpu.memory_space<vmem>>, vector<2x1x256xf32>
    tpu.vector_store %arg7[%c0_25, %c0_26, %c0_27], %35 {strides = array<i32>} : memref<2x1x256xf32, #tpu.memory_space<vmem>>, vector<2x1x256xf32>,
    return
  }
  func.func @transform_0(%arg0: i32) -> (i32, i32, i32) {
    %c0_i32 = arith.constant 0 : i32
    %c0_i32_0 = arith.constant 0 : i32
    %c0_i32_1 = arith.constant 0 : i32
    return %arg0, %c0_i32, %c0_i32_0 : i32, i32, i32
  }
  func.func @transform_1(%arg0: i32) -> (i32, i32, i32) {
    %c0_i32 = arith.constant 0 : i32
    %c0_i32_0 = arith.constant 0 : i32
    %c0_i32_1 = arith.constant 0 : i32
    return %arg0, %c0_i32, %c0_i32_0 : i32, i32, i32
  }
  func.func @transform_2(%arg0: i32) -> (i32, i32) {
    %c0_i32 = arith.constant 0 : i32
    %c0_i32_0 = arith.constant 0 : i32
    %c0_i32_1 = arith.constant 0 : i32
    return %c0_i32, %c0_i32_0 : i32, i32
  }
  func.func @transform_3(%arg0: i32) -> (i32, i32) {
    %c0_i32 = arith.constant 0 : i32
    %c0_i32_0 = arith.constant 0 : i32
    %c0_i32_1 = arith.constant 0 : i32
    return %c0_i32, %c0_i32_0 : i32, i32
  }
  func.func @transform_4(%arg0: i32) -> (i32, i32, i32) {
    %c0_i32 = arith.constant 0 : i32
    %c0_i32_0 = arith.constant 0 : i32
    %c0_i32_1 = arith.constant 0 : i32
    return %arg0, %c0_i32, %c0_i32_0 : i32, i32, i32
  }
  func.func @transform_5(%arg0: i32) -> (i32, i32, i32) {
    %c0_i32 = arith.constant 0 : i32
    %c0_i32_0 = arith.constant 0 : i32
    %c0_i32_1 = arith.constant 0 : i32
    return %arg0, %c0_i32, %c0_i32_0 : i32, i32, i32
  }
  func.func @transform_6(%arg0: i32) -> (i32, i32, i32) {
    %c0_i32 = arith.constant 0 : i32
    %c0_i32_0 = arith.constant 0 : i32
    %c0_i32_1 = arith.constant 0 : i32
    return %arg0, %c0_i32, %c0_i32_0 : i32, i32, i32
  }
}

</mosaic_0001>

<bundles_post_ra>
// kernel: fused_encoder_pallas.1
= control target key start
LH: loop header
LB: loop body
LE: loop exit
PB: predicated region body
PF: predicated region fallthrough
CT: control target
= control target key end

     0   :  { %s861_s21 = smov 0   ;;  %s973_s0 = inlined_call_operand.vmem [shape: bf16[4,32,256], index: 0, kind: input, shape index: {}]   ;;  %s974_s1 = inlined_call_operand.vmem [shape: f32[4,3,256], index: 1, kind: input, shape index: {}]   ;;  %s975_s2 = inlined_call_operand.vmem [shape: bf16[32,32], index: 2, kind: input, shape index: {}]   ;;  %s976_s3 = inlined_call_operand.vmem [shape: f32[32,1], index: 3, kind: input, shape index: {}]   ;;  %s977_s4 = inlined_call_operand.vmem [shape: f32[4,32,256], index: 4, kind: output, shape index: {0}]   ;;  %s978_s5 = inlined_call_operand.vmem [shape: f32[4,1,256], index: 5, kind: output, shape index: {1}]   ;;  %s979_s6 = inlined_call_operand.vmem [shape: f32[4,1,256], index: 6, kind: output, shape index: {2}]  }
   0x1 LB: > { %s705_s22 = sadd.s32 4294967295, %s822_s21   ;;  %p709_p0 = scmp.ge.s32.totalorder %s822_s21, 1  ;;  %s822_s21 = sphi %s861_s21, %s17_s21  }
   0x2   : > { %p231_p1 = scmp.lt.s32.totalorder %s822_s21, 3 }
   0x4   : > { %p232_p2 = pnand %p709_p0, %p231_p1 }
   0x5   : > { %s710_s23 = sshll.u32 (!%p232_p2), %s705_s22, 1 }
   0x6   : > { %235 = sbr.rel (%p232_p2) target bundleno = 190 (0xbe), region = 36  ;;  %p280_p3 = scmp.lt.s32.totalorder (!%p232_p2), %s710_s23, 3 }
   0xb   : > { %v317_v0 = vld [vmem:[%s976_s3] sm:$0xff]  ;;  %v533_v1 = vlaneseq  ;;  %v824_v2 = vmov 0   ;;  %s983_s23 = smov (!%p280_p3, %s710_s23), 3  ;;  %v319_v3 = vld [vmem:[%s976_s3 + $0x10] sm:$0xff]  ;;  %vm528_vm0 = vcmask 1040384   ;;  %v318_v7 = vld [vmem:[%s976_s3 + $0x8] sm:$0xff] }
   0xc   : > { %814 = vset.pattern.permute.xlu0 %v824_v2  ;;  %815 = vset.pattern.permute.xlu1 %v824_v2  ;;  %s791_s26 = sshll.u32 %s983_s23, 5  ;;  %s792_s27 = sshll.u32 %s983_s23, 3  ;;  %v825_v15 = vmov 0.0   ;;  %v320_v21 = vld [vmem:[%s976_s3 + $0x18] sm:$0xff]  ;;  %v794_v37 = vld [vmem:[%s975_s2] sm:$0xff]  ;;  %vm375_vm6 = vcmask 261120  }
   0xd   : > { %327 = vperm.xlu0 %814, %v317_v0   ;;  %s882_s8 = scalar_lea.vmem %s973_s0, %s791_s26  ;;  %s291_s11 = scalar_lea.vmem %s974_s1, %s792_s27  ;;  %vm887_vm1 = vcmp.lt.s32.totalorder %v533_v1, 256  ;;  %337 = vperm.xlu1 %815, %v319_v3   ;;  %v795_v49 = vld [vmem:[%s975_s2 + $0x8] sm:$0xff] }
   0xe   : > { %s720_s12 = sshll.u32 %s983_s23, 1  ;;  %v741_v5 = vld [vmem:[%s882_s8 + $0x10] sm:$0xf]  ;;  %v799_v6 = vld [vmem:[%s882_s8 + $0x14] sm:$0xf0]  ;;  %s793_s29 = sshll.u32 %s983_s23, 6 }
   0xf   : > { %v742_v8 = vor.u32 %v799_v6, %v741_v5  ;;  %v516_v9 = vld [vmem:[%s291_s11] sm:$0x77]  ;;  %v517_v10 = vld [vmem:[%s291_s11 + $0x8] sm:$0x77]  ;;  %v798_v11 = vld [vmem:[%s882_s8 + $0x14] sm:$0xf]  ;;  %s304_s19 = scalar_lea.vmem %s978_s5, %s720_s12  ;;  %s310_s26 = scalar_lea.vmem %s979_s6, %s720_s12 }
  0x10   : > { %vm518_vm2 = vcmp.eq.f32.partialorder %v516_v9, 0.0  ;;  %vm519_vm3 = vcmp.eq.f32.partialorder %v517_v10, 0.0  ;;  %v785_v12 = vrot.slane %v516_v9, 9  ;;  %v786_v13 = vrot.slane %v517_v10, 9  ;;  %v743_v14 = vld [vmem:[%s882_s8 + $0x18] sm:$0xf0] }
  0x11   : > { %388 = vmatpush.bf16.msra.mxu0 %v742_v8  ;;  %v783_v16 = vsel %vm518_vm2, 1.0, %v825_v15  ;;  %v784_v17 = vsel %vm519_vm3, 1.0, %v825_v15  ;;  %v746_v18 = vor.u32 %v798_v11, %v743_v14  ;;  %v765_v19 = vld [vmem:[%s882_s8 + $0x30] sm:$0xf]  ;;  %v803_v20 = vld [vmem:[%s882_s8 + $0x34] sm:$0xf0] }
  0x12   : > { %v526_v22 = vrot.slane %v783_v16, 3  ;;  %v527_v23 = vrot.slane %v784_v17, 3  ;;  %v547_v24 = vmul.f32 %v785_v12, %v516_v9  ;;  %v548_v25 = vmul.f32 %v786_v13, %v517_v10  ;;  %v802_v26 = vld [vmem:[%s882_s8 + $0x34] sm:$0xf]  ;;  %v767_v27 = vld [vmem:[%s882_s8 + $0x38] sm:$0xf0] }
  0x13   : > { %407 = vmatpush.bf16.msra.mxu1 %v746_v18  ;;  %v766_v28 = vor.u32 %v803_v20, %v765_v19  ;;  %v770_v29 = vor.u32 %v802_v26, %v767_v27  ;;  %v733_v30 = vld [vmem:[%s882_s8] sm:$0xf]  ;;  %v797_v31 = vld [vmem:[%s882_s8 + $0x4] sm:$0xf0]  ;;  %v796_v32 = vld [vmem:[%s882_s8 + $0x4] sm:$0xf] }
  0x14   : > { %v529_v33 = vsel %vm528_vm0, %v783_v16, %v526_v22  ;;  %v530_v34 = vsel %vm528_vm0, %v784_v17, %v527_v23  ;;  %vm549_vm4 = vcmp.gt.f32.partialorder %v547_v24, 0.0  ;;  %vm550_vm5 = vcmp.gt.f32.partialorder %v548_v25, 0.0  ;;  %v735_v35 = vld [vmem:[%s882_s8 + $0x8] sm:$0xf0]  ;;  %v757_v36 = vld [vmem:[%s882_s8 + $0x20] sm:$0xf] }
  0x15   : > { %332 = vperm.xlu0 %814, %v318_v7   ;;  %537 = vst.msk [vmem:[%s304_s19] sm:$0x3] %vm887_vm1, %v529_v33  ;;  %v787_v38 = vsel %vm549_vm4, 1.0, %v825_v15  ;;  %v788_v39 = vsel %vm550_vm5, 1.0, %v825_v15  ;;  %467 = vmatpush.bf16.msra.mxu2 %v766_v28  ;;  %v734_v40 = vor.u32 %v797_v31, %v733_v30  ;;  %v738_v41 = vor.u32 %v796_v32, %v735_v35  ;;  %v801_v42 = vld [vmem:[%s882_s8 + $0x24] sm:$0xf0] }
  0x16   : > { %486 = vmatpush.bf16.msra.mxu3 %v770_v29  ;;  %538 = vst.msk [vmem:[%s304_s19 + $0x2] sm:$0x3] %vm887_vm1, %v530_v34  ;;  %v758_v43 = vor.u32 %v801_v42, %v757_v36  ;;  %v800_v44 = vld [vmem:[%s882_s8 + $0x24] sm:$0xf]  ;;  %v759_v45 = vld [vmem:[%s882_s8 + $0x28] sm:$0xf0]  ;;  %342 = vperm.xlu1 %815, %v320_v21   ;;  %s952_s8 = scalar_lea.vmem %s977_s4, %s793_s29 }
  0x17   : > { %557 = vst [vmem:[#allocation1] sm:$0xff] %v787_v38  ;;  %389 = vmatpush.bf16.msra.mxu0 %v734_v40  ;;  %408 = vmatpush.bf16.msra.mxu1 %v738_v41  ;;  %v762_v46 = vor.u32 %v800_v44, %v759_v45 }
  0x18   : > { %560 = vst [vmem:[#allocation1 + $0x20] sm:$0xff] %v788_v39 }
  0x19   : > { %468 = vmatpush.bf16.msra.mxu2 %v758_v43 }
  0x1a   : > { %487 = vmatpush.bf16.msra.mxu3 %v762_v46  ;;  %747 = vmatmul.msk.bf16.vlgmr.msra.gmra.mxu0 %vm375_vm6, %v794_v37 }
  0x1b   : > { %749 = vmatmul.msk.bf16.vlgmr.msra.gmra.mxu1 %vm375_vm6, %v794_v37 }
  0x1c   : > { %771 = vmatmul.msk.bf16.vlgmr.msra.gmra.mxu2 %vm375_vm6, %v794_v37 }
  0x1d   : > { %773 = vmatmul.msk.bf16.vlgmr.msra.gmra.mxu3 %vm375_vm6, %v794_v37 }
  0x1e   : > { %v559_v47 = vld [vmem:[#allocation1 + $0x1] ss:$4 sm:$0xff] }
  0x1f   : > { %v562_v48 = vld [vmem:[#allocation1 + $0x21] ss:$4 sm:$0xff]  ;;  %565 = vst.msk [vmem:[%s310_s26] sm:$0x3] %vm887_vm1, %v559_v47 }
  0x20   : > { %566 = vst.msk [vmem:[%s310_s26 + $0x2] sm:$0x3] %vm887_vm1, %v562_v48 }
  0x2a   : > { %748 = vmatmul.msk.bf16.gmra.mxu0 %vm375_vm6, %v795_v49 }
  0x2b   : > { %750 = vmatmul.msk.bf16.gmra.mxu1 %vm375_vm6, %v795_v49 }
  0x2c   : > { %772 = vmatmul.msk.bf16.gmra.mxu2 %vm375_vm6, %v795_v49 }
  0x2d   : > { %774 = vmatmul.msk.bf16.gmra.mxu3 %vm375_vm6, %v795_v49 }
  0x7f   : > { %v328_v50 = vpop.permute.xlu0 %327  ;;  %v338_v6 = vpop.permute.xlu1 %337 }
  0x87   : > { %v333_v57 = vpop.permute.xlu0 %332 }
  0x88   : > { %v343_v19 = vpop.permute.xlu1 %342 }
  0x97   : > { %v391_v51 = vpop.f32.mrf.mxu0 }
  0x98   : > { %v410_v52 = vpop.f32.mrf.mxu1  ;;  %v392_v53 = vadd.f32 %v391_v51, %v328_v50 }
  0x99   : > { %v411_v54 = vadd.f32 %v410_v52, %v328_v50 }
  0x9a   : > { %v420_v55 = vmax.f32 %v392_v53, 0.0 }
  0x9b   : > { %v421_v56 = vmax.f32 %v411_v54, 0.0 }
  0x9c   : > { %428 = vst [vmem:[%s952_s8] sm:$0xff] %v420_v55 }
  0x9d   : > { %429 = vst [vmem:[%s952_s8 + $0x8] sm:$0xff] %v421_v56 }
  0x9f   : > { %v470_v58 = vpop.f32.mrf.mxu2  ;;  %v393_v62 = vpop.f32.mrf.mxu0 }
  0xa0   : > { %v489_v59 = vpop.f32.mrf.mxu3  ;;  %v471_v60 = vadd.f32 %v470_v58, %v328_v50  ;;  %v412_v63 = vpop.f32.mrf.mxu1  ;;  %v394_v0 = vadd.f32 %v393_v62, %v333_v57 }
  0xa1   : > { %v490_v61 = vadd.f32 %v489_v59, %v328_v50  ;;  %v413_v1 = vadd.f32 %v412_v63, %v333_v57 }
  0xa2   : > { %v499_v2 = vmax.f32 %v471_v60, 0.0  ;;  %v422_v4 = vmax.f32 %v394_v0, 0.0 }
  0xa3   : > { %v500_v3 = vmax.f32 %v490_v61, 0.0  ;;  %v423_v5 = vmax.f32 %v413_v1, 0.0 }
  0xa4   : > { %775 = vst [vmem:[%s952_s8 + $0x40] sm:$0xff] %v499_v2 }
  0xa5   : > { %776 = vst [vmem:[%s952_s8 + $0x48] sm:$0xff] %v500_v3 }
  0xa6   : > { %430 = vst [vmem:[%s952_s8 + $0x10] sm:$0xff] %v422_v4 }
  0xa7   : > { %431 = vst [vmem:[%s952_s8 + $0x18] sm:$0xff] %v423_v5  ;;  %v472_v7 = vpop.f32.mrf.mxu2  ;;  %v396_v11 = vpop.f32.mrf.mxu0 }
  0xa8   : > { %v491_v8 = vpop.f32.mrf.mxu3  ;;  %v473_v9 = vadd.f32 %v472_v7, %v333_v57  ;;  %v415_v12 = vpop.f32.mrf.mxu1  ;;  %v397_v13 = vadd.f32 %v396_v11, %v338_v6 }
  0xa9   : > { %v492_v10 = vadd.f32 %v491_v8, %v333_v57  ;;  %v416_v14 = vadd.f32 %v415_v12, %v338_v6 }
  0xaa   : > { %v501_v15 = vmax.f32 %v473_v9, 0.0  ;;  %v424_v17 = vmax.f32 %v397_v13, 0.0 }
  0xab   : > { %v502_v16 = vmax.f32 %v492_v10, 0.0  ;;  %v425_v18 = vmax.f32 %v416_v14, 0.0 }
  0xac   : > { %777 = vst [vmem:[%s952_s8 + $0x50] sm:$0xff] %v501_v15 }
  0xad   : > { %778 = vst [vmem:[%s952_s8 + $0x58] sm:$0xff] %v502_v16 }
  0xae   : > { %432 = vst [vmem:[%s952_s8 + $0x20] sm:$0xff] %v424_v17 }
  0xaf   : > { %433 = vst [vmem:[%s952_s8 + $0x28] sm:$0xff] %v425_v18  ;;  %v475_v20 = vpop.f32.mrf.mxu2  ;;  %v398_v24 = vpop.f32.mrf.mxu0 }
  0xb0   : > { %v494_v21 = vpop.f32.mrf.mxu3  ;;  %v476_v22 = vadd.f32 %v475_v20, %v338_v6  ;;  %v417_v25 = vpop.f32.mrf.mxu1  ;;  %v399_v26 = vadd.f32 %v398_v24, %v343_v19 }
  0xb1   : > { %v495_v23 = vadd.f32 %v494_v21, %v338_v6  ;;  %v418_v27 = vadd.f32 %v417_v25, %v343_v19 }
  0xb2   : > { %v503_v28 = vmax.f32 %v476_v22, 0.0  ;;  %v426_v30 = vmax.f32 %v399_v26, 0.0 }
  0xb3   : > { %v504_v29 = vmax.f32 %v495_v23, 0.0  ;;  %v427_v31 = vmax.f32 %v418_v27, 0.0 }
  0xb4   : > { %779 = vst [vmem:[%s952_s8 + $0x60] sm:$0xff] %v503_v28 }
  0xb5   : > { %780 = vst [vmem:[%s952_s8 + $0x68] sm:$0xff] %v504_v29 }
  0xb6   : > { %434 = vst [vmem:[%s952_s8 + $0x30] sm:$0xff] %v426_v30 }
  0xb7   : > { %435 = vst [vmem:[%s952_s8 + $0x38] sm:$0xff] %v427_v31  ;;  %v477_v32 = vpop.f32.mrf.mxu2 }
  0xb8   : > { %v496_v33 = vpop.f32.mrf.mxu3  ;;  %v478_v34 = vadd.f32 %v477_v32, %v343_v19 }
  0xb9   : > { %v497_v35 = vadd.f32 %v496_v33, %v343_v19 }
  0xba   : > { %v505_v36 = vmax.f32 %v478_v34, 0.0 }
  0xbb   : > { %v506_v37 = vmax.f32 %v497_v35, 0.0 }
  0xbc   : > { %781 = vst [vmem:[%s952_s8 + $0x70] sm:$0xff] %v505_v36 }
  0xbd   : > { %782 = vst [vmem:[%s952_s8 + $0x78] sm:$0xff] %v506_v37 }
  0xbe PF: > { %s17_s21 = sadd.s32 1, %s822_s21  }
  0xbf   : > { %p14_p4 = scmp.ge.s32.totalorder %s17_s21, 4  }
  0xc1   :  { %16 = sbr.rel (!%p14_p4) target bundleno = 1 (0x1), region = 97 }

</bundles_post_ra>
